<compile_context>
chip_gen: v7x
topology: tpu7x:2x2x1
jax: 0.10.0
libtpu: 0.0.40
codegen_flags: <defaults>
</compile_context>

<pallas_src>
import jax
import jax.numpy as jnp
from jax.experimental import pallas as pl
from jax.experimental.pallas import tpu as pltpu

_SUBLANE = 8


def _round_up(n, m):
    return ((n + m - 1) // m) * m


def _cdiv(a, b):
    return -(-a // b)


def _tpu_vmem_capacity_bytes():
    """Physical VMEM per core; conservative (v7x-like) fallback if unavailable."""
    try:
        info = pltpu.get_tpu_info()
        return int(getattr(info, "vmem_capacity_bytes", 64 << 20))
    except Exception:
        return 64 << 20


def _make_se_kernel(inv_hw):
    """inv_hw = 1 / (H*W)."""

    def kernel(x_ref, w1_ref, w2_ref, o_ref):
        # x_ref/o_ref: (bb, C, HW)   w1_ref: (C, Crp)   w2_ref: (Crp, C)
        x = x_ref[...]  # native dtype; no full-tile f32 copy
        # Global average pool over spatial, f32 accumulator.
        y = jnp.sum(x, axis=-1, dtype=jnp.float32) * jnp.float32(inv_hw)   # (bb, C)
        # Batched tiny FCs on the MXU: fc1 + ReLU, fc2 + sigmoid.
        h = jnp.dot(y, w1_ref[...].astype(jnp.float32),
                    preferred_element_type=jnp.float32)
        h = jnp.maximum(h, 0.0)
        s = jnp.dot(h, w2_ref[...].astype(jnp.float32),
                    preferred_element_type=jnp.float32)
        s = jax.nn.sigmoid(s)                                               # (bb, C)
        # x * y.expand_as(x), in the activation's native dtype.
        o_ref[...] = (x * s.astype(x.dtype)[:, :, None]).astype(o_ref.dtype)

    return kernel


def channel_attention(x, w1, w2, *, vmem_budget_bytes=None):
    """SE-block forward.

    x : (B, C, H, W)   activation (f32 or bf16)
    w1: (C, C//r)      first Linear, stored (in, out)  (== PyTorch weight.T)
    w2: (C//r, C)      second Linear, stored (in, out)
    """
    B, C, H, W = x.shape
    HW = H * W
    Cr = w1.shape[1]
    dsize = jnp.dtype(x.dtype).itemsize

    # --- generation plumbing -------------------------------------------------
    vmem_cap = _tpu_vmem_capacity_bytes()
    small_vmem = vmem_cap <= (64 << 20)          # v7x-like: 64 MiB VMEM, 2 TCs/chip
    two_tc = small_vmem
    if vmem_budget_bytes is None:
        vmem_budget_bytes = (24 << 20) if small_vmem else (80 << 20)
    vmem_limit_cap = (48 << 20) if small_vmem else (100 << 20)

    # --- flatten spatial: metadata-only reshape, no pad, no extra HBM pass ---
    x_flat = x.reshape(B, C, HW)

    # --- pad only the tiny FC bottleneck dim to a full sublane group (exact) -
    Crp = max(_round_up(Cr, _SUBLANE), _SUBLANE)
    if Crp != Cr:
        w1 = jnp.pad(w1, ((0, 0), (0, Crp - Cr)))
        w2 = jnp.pad(w2, ((0, Crp - Cr), (0, 0)))

    # --- batch blocking (no activation padding; partial last block is safe) --
    # Per batch element in VMEM: input tile + output tile, each double-buffered.
    per_b_bytes = 4 * C * HW * dsize
    max_bb = max(1, vmem_budget_bytes // per_b_bytes)
    min_steps = 2 if (two_tc and B >= 2) else 1
    num_steps = max(min_steps, _cdiv(B, max_bb))
    if two_tc and B >= 2 and num_steps % 2 == 1 and num_steps + 1 <= B:
        num_steps += 1                            # even split across the 2 TCs
    bb = _cdiv(B, num_steps)
    num_steps = _cdiv(B, bb)                      # drop fully-empty trailing steps

    weight_bytes = int(w1.size * w1.dtype.itemsize + w2.size * w2.dtype.itemsize)
    tile_bytes = bb * C * HW * dsize
    # double-buffered in + out tiles, (double-buffered) weights, Mosaic scratch headroom
    # (weights are a few KiB; pl.Buffered(1) on them would only shave that much)
    vmem_limit = 4 * tile_bytes + 4 * weight_bytes + (8 << 20)
    vmem_limit = int(min(max(vmem_limit, 16 << 20), vmem_limit_cap))

    # Memory-bound custom call: tell the XLA scheduler (bytes dominate flops).
    cost = pl.CostEstimate(
        flops=int(2 * B * C * HW + 2 * B * (C * Crp + Crp * C)),
        transcendentals=int(B * C),
        bytes_accessed=int(2 * B * C * HW * dsize + weight_bytes),
    )

    kernel = _make_se_kernel(1.0 / float(HW))

    out = pl.pallas_call(
        kernel,
        out_shape=jax.ShapeDtypeStruct((B, C, HW), x.dtype),
        grid_spec=pltpu.PrefetchScalarGridSpec(
            num_scalar_prefetch=0,
            grid=(num_steps,),
            in_specs=[
                pl.BlockSpec((bb, C, HW), lambda b: (b, 0, 0)),
                pl.BlockSpec((C, Crp), lambda b: (0, 0)),
                pl.BlockSpec((Crp, C), lambda b: (0, 0)),
            ],
            out_specs=pl.BlockSpec((bb, C, HW), lambda b: (b, 0, 0)),
        ),
        compiler_params=pltpu.CompilerParams(
            dimension_semantics=("parallel",),
            vmem_limit_bytes=vmem_limit,
        ),
        cost_estimate=cost,
    )(x_flat, w1, w2)

    return out.reshape(B, C, H, W)


def _reference(x, w1, w2):
    y = jnp.mean(x, axis=(2, 3))                  # (B, C)
    h = jnp.maximum(y @ w1, 0.0)
    s = jax.nn.sigmoid(h @ w2)
    return x * s[:, :, None, None]


if __name__ == "__main__":
    key = jax.random.PRNGKey(0)

    # --- main case: lane/sublane friendly small shapes -----------------------
    B, C, H, W = 2, 128, 16, 16          # HW = 256 (lane dense), Cr = 8
    reduction = 16
    Cr = C // reduction

    kx, k1, k2, kx2, k3, k4 = jax.random.split(key, 6)
    x = jax.random.normal(kx, (B, C, H, W), dtype=jnp.float32)
    w1 = jax.random.normal(k1, (C, Cr), dtype=jnp.float32) * 0.1
    w2 = jax.random.normal(k2, (Cr, C), dtype=jnp.float32) * 0.1

    out = channel_attention(x, w1, w2)
    jax.block_until_ready(out)
    ref = _reference(x, w1, w2)
    assert jnp.allclose(out, ref, atol=1e-5, rtol=1e-5), "mismatch vs reference (main)"

    # --- odd-shaped case: non-128 HW, padded Cr, partial batch block ---------
    Bo, Co, Ho, Wo, Cro = 3, 96, 7, 7, 6
    xo = jax.random.normal(kx2, (Bo, Co, Ho, Wo), dtype=jnp.float32)
    w1o = jax.random.normal(k3, (Co, Cro), dtype=jnp.float32) * 0.1
    w2o = jax.random.normal(k4, (Cro, Co), dtype=jnp.float32) * 0.1

    outo = channel_attention(xo, w1o, w2o)
    jax.block_until_ready(outo)
    refo = _reference(xo, w1o, w2o)
    assert jnp.allclose(outo, refo, atol=1e-5, rtol=1e-5), "mismatch vs reference (odd)"

    print("KERNEL_OK")
</pallas_src>

<mosaic_0001>
module attributes {stable_mosaic.version = 11 : i64} {
  func.func @kernel(%arg0: i32, %arg1: memref<1x128x256xf32, #tpu.memory_space<vmem>>, %arg2: memref<128x8xf32, #tpu.memory_space<vmem>>, %arg3: memref<8x128xf32, #tpu.memory_space<vmem>>, %arg4: memref<1x128x256xf32, #tpu.memory_space<vmem>>) attributes {dimension_semantics = [#tpu.dimension_semantics<parallel>], iteration_bounds = array<i64: 2>, scalar_prefetch = 0 : i64, scratch_operands = 0 : i64, tpu.core_type = #tpu.core_type<tc>, window_params = [{transform_indices = @transform_0, window_bounds = array<i64: 1, 128, 256>}, {pipeline_mode = #tpu.pipeline_mode<synchronous>, transform_indices = @transform_1, window_bounds = array<i64: 128, 8>}, {pipeline_mode = #tpu.pipeline_mode<synchronous>, transform_indices = @transform_2, window_bounds = array<i64: 8, 128>}, {transform_indices = @transform_3, window_bounds = array<i64: 1, 128, 256>}]} {
    %c0 = arith.constant 0 : index
    %c0_0 = arith.constant 0 : index
    %c0_1 = arith.constant 0 : index
    %0 = vector.load %arg1[%c0, %c0_0, %c0_1] : memref<1x128x256xf32, #tpu.memory_space<vmem>>, vector<1x128x256xf32>
    %cst = arith.constant dense<0.000000e+00> : vector<1x128xf32>
    %1 = vector.multi_reduction <add>, %0, %cst [2] : vector<1x128x256xf32> to vector<1x128xf32>
    %cst_2 = arith.constant 3.906250e-03 : f32
    %2 = vector.broadcast %cst_2 : f32 to vector<1x128xf32>
    %3 = arith.mulf %1, %2 : vector<1x128xf32>
    %c0_3 = arith.constant 0 : index
    %c0_4 = arith.constant 0 : index
    %4 = vector.load %arg2[%c0_3, %c0_4] : memref<128x8xf32, #tpu.memory_space<vmem>>, vector<128x8xf32>
    %cst_5 = arith.constant dense<0.000000e+00> : vector<1x8xf32>
    %5 = tpu.matmul %3, %4, %cst_5 {dimension_numbers = #tpu.dot_dimension_numbers<[1], [0], [0], [1], [0, 0, 1, 1], [], []>} : vector<1x128xf32>, vector<128x8xf32>, vector<1x8xf32> -> vector<1x8xf32>
    %cst_6 = arith.constant 0.000000e+00 : f32
    %6 = vector.broadcast %cst_6 : f32 to vector<1x8xf32>
    %7 = arith.maximumf %5, %6 : vector<1x8xf32>
    %c0_7 = arith.constant 0 : index
    %c0_8 = arith.constant 0 : index
    %8 = vector.load %arg3[%c0_7, %c0_8] : memref<8x128xf32, #tpu.memory_space<vmem>>, vector<8x128xf32>
    %cst_9 = arith.constant dense<0.000000e+00> : vector<1x128xf32>
    %9 = tpu.matmul %7, %8, %cst_9 {dimension_numbers = #tpu.dot_dimension_numbers<[1], [0], [0], [1], [0, 0, 1, 1], [], []>} : vector<1x8xf32>, vector<8x128xf32>, vector<1x128xf32> -> vector<1x128xf32>
    %10 = arith.negf %9 : vector<1x128xf32>
    %11 = math.exp %10 : vector<1x128xf32>
    %cst_10 = arith.constant 1.000000e+00 : f32
    %12 = vector.broadcast %cst_10 : f32 to vector<1x128xf32>
    %13 = arith.addf %12, %11 : vector<1x128xf32>
    %14 = arith.divf %12, %13 : vector<1x128xf32>
    %15 = vector.shape_cast %14 : vector<1x128xf32> to vector<1x128x1xf32>
    %16 = vector.broadcast %15 : vector<1x128x1xf32> to vector<1x128x256xf32>
    %17 = arith.mulf %0, %16 : vector<1x128x256xf32>
    %c0_11 = arith.constant 0 : index
    %c0_12 = arith.constant 0 : index
    %c0_13 = arith.constant 0 : index
    %18 = vector.load %arg4[%c0_11, %c0_12, %c0_13] : memref<1x128x256xf32, #tpu.memory_space<vmem>>, vector<1x128x256xf32>
    tpu.vector_store %arg4[%c0_11, %c0_12, %c0_13], %17 {strides = array<i32>} : memref<1x128x256xf32, #tpu.memory_space<vmem>>, vector<1x128x256xf32>,
    return
  }
  func.func @transform_0(%arg0: i32) -> (i32, i32, i32) {
    %c0_i32 = arith.constant 0 : i32
    %c0_i32_0 = arith.constant 0 : i32
    %c0_i32_1 = arith.constant 0 : i32
    return %arg0, %c0_i32, %c0_i32_0 : i32, i32, i32
  }
  func.func @transform_1(%arg0: i32) -> (i32, i32) {
    %c0_i32 = arith.constant 0 : i32
    %c0_i32_0 = arith.constant 0 : i32
    %c0_i32_1 = arith.constant 0 : i32
    return %c0_i32, %c0_i32_0 : i32, i32
  }
  func.func @transform_2(%arg0: i32) -> (i32, i32) {
    %c0_i32 = arith.constant 0 : i32
    %c0_i32_0 = arith.constant 0 : i32
    %c0_i32_1 = arith.constant 0 : i32
    return %c0_i32, %c0_i32_0 : i32, i32
  }
  func.func @transform_3(%arg0: i32) -> (i32, i32, i32) {
    %c0_i32 = arith.constant 0 : i32
    %c0_i32_0 = arith.constant 0 : i32
    %c0_i32_1 = arith.constant 0 : i32
    return %arg0, %c0_i32, %c0_i32_0 : i32, i32, i32
  }
}

</mosaic_0001>

<bundles_post_ra>
// kernel: tpu_custom_call.1
= control target key start
LH: loop header
LB: loop body
LE: loop exit
PB: predicated region body
PF: predicated region fallthrough
CT: control target
= control target key end

     0   :  { %8 = vsyncpa [#allocation3], 0  ;;  %s1536_s0 = inlined_call_operand.hbm [shape: f32[2,128,256], index: 0, kind: input, shape index: {}]   ;;  %s1537_s1 = inlined_call_operand.vmem [shape: f32[128,8], index: 1, kind: input, shape index: {}]   ;;  %s1538_s2 = inlined_call_operand.vmem [shape: f32[8,128], index: 2, kind: input, shape index: {}]   ;;  %s1539_s3 = inlined_call_operand.hbm [shape: f32[2,128,256], index: 3, kind: output, shape index: {}]  }
   0x1   :  { %10 = vsyncpa [#allocation3 + $0x1], 0 }
   0x2   :  { %11 = vsyncpa [#allocation4], 0 }
   0x3   :  { %13 = vsyncpa [#allocation4 + $0x1], 0  ;;  %s1084_s12 = smov 0   ;;  %s1086_s13 = smov 0  }
   0x4   :  { %s1088_s14 = smov 0   ;;  %s1090_s15 = smov 0  }
   0x5 LB: > { %s1105_s16 = sadd.s32 4294967295, %s1053_s15   ;;  %s799_s17 = sadd.s32 4294967294, %s1053_s15   ;;  %s1053_s15 = sphi %s1090_s15, %s1552_s15   ;;  %s1049_s14 = sphi %s1088_s14, %s1551_s14   ;;  %s1045_s13 = sphi %s1086_s13, %s1550_s13   ;;  %s1041_s12 = sphi %s1084_s12, %s1549_s12  }
   0x6   : > { %s1109_s18 = sadd.s32 1, %s1053_s15   ;;  %s26_s19 = sadd.s32 1, %s1049_s14 }
   0x7   : > { %s23_s20 = ssub.s32 %s1053_s15, %s1109_s18  ;;  %p33_p0 = scmp.ne.s32.totalorder %s1049_s14, %s1045_s13 }
   0x8   : > { %p24_p1 = scmp.eq.s32.totalorder %s23_s20, 0  ;;  %p34_p2 = scmp.eq.s32.totalorder %s1053_s15, 0 }
   0x9   : > { %p39_p3 = scmp.ne.s32.totalorder %s1045_s13, %s1041_s12  ;;  %p40_p4 = scmp.eq.s32.totalorder %s1105_s16, 0 }
   0xa   : > { %s1121_s21 = scalar_select %p24_p1, %s1049_s14, %s26_s19  }
   0xb   : > { %p1123_p5 = por %p34_p2, %p33_p0  ;;  %p1127_p6 = por %p40_p4, %p39_p3 }
   0xc   : > { %p105_p7 = scmp.eq.s32.totalorder %s1105_s16, 1  ;;  %p111_p8 = scmp.eq.s32.totalorder %s799_s17, 1 }
   0xd   : > { %p912_p10 = scmp.lt.s32.totalorder %s1053_s15, 2  ;;  %s137_s26 = sand.u32 1, %s1049_s14  }
   0xe   : > { %p1134_p11 = por %p105_p7, %p33_p0  ;;  %p1138_p12 = por %p111_p8, %p39_p3 }
   0xf   : > { %s815_s27 = sshll.u32 %s1053_s15, 12  ;;  %s802_s28 = sshll.u32 %s137_s26, 8 }
  0x10   : > { %s1543_s24 = scalar_select %p1134_p11, 1, 0 }
  0x11   : > { %s1544_s25 = scalar_select %p1138_p12, 1, 0 }
  0x12   : > { %s1147_s4 = scalar_lea.hbm %s1536_s0, %s815_s27  ;;  %s141_s5 = scalar_lea.vmem [#allocation2], %s802_s28 }
  0x13   : > { %s148_s6 = sshll.u32 %s141_s5, 4  ;;  %p1151_p13 = pnand %p912_p10, %p1123_p5  ;;  %s1155_s6 = int_to_ptr.vmem [resolvable:$true] %s148_s6 }
  0x14   : > { %s1157_s8 = scalar_lea.sflag [#allocation3], %s137_s26  ;;  %s957_s9 = scalar_lea.hbm %s1147_s4, 4096 }
  0x15   : > { %p958_p0 = scmp.ne.s32.totalorder %s1147_s4, %s957_s9  ;;  %p959_p1 = pneg %p1151_p13 }
  0x16   : > { %s962_s17 = scalar_lea.hbm %s1536_s0, 8192  ;;  %p963_p4 = scmp.lt.u32.totalorder %s1147_s4, %s1536_s0 }
  0x17   : > { %p960_p2 = pnand %p959_p1, %p958_p0  ;;  %p964_p5 = scmp.lt.u32.totalorder %s962_s17, %s957_s9 }
  0x18   : > { %p966_p8 = scmp.lt.u32.totalorder %s957_s9, %s1147_s4 }
  0x19   : > { %p961_p3 = pneg %p960_p2  ;;  %p965_p7 = por %p964_p5, %p963_p4 }
  0x1b   : > { %p967_p10 = por %p966_p8, %p965_p7 }
  0x1d   : > { %p968_p9 = pnand %p967_p10, %p961_p3 }
  0x1f   : > { %971 = shalt.err (!%p968_p9)
}
  0x20   : > { %s972_s22 = scalar_lea.vmem %s1155_s6, 4096  ;;  %s1055_s26 = smov [#allocation2]  }
  0x21   : > { %p973_p0 = scmp.ne.s32.totalorder %s1155_s6, %s972_s22  ;;  %s977_s27 = sshll.u32 %s1055_s26, 4  ;;  %s978_s27 = int_to_ptr.vmem [resolvable:$false] %s977_s27 }
  0x22   : > { %s979_s28 = scalar_lea.vmem %s978_s27, 8192  ;;  %p980_p11 = scmp.lt.s32.totalorder %s1155_s6, %s978_s27 }
  0x23   : > { %p975_p2 = pnand %p973_p0, %p959_p1  ;;  %p981_p4 = scmp.lt.s32.totalorder %s979_s28, %s972_s22 }
  0x25   : > { %p976_p12 = pneg %p975_p2  ;;  %p982_p5 = por %p981_p4, %p980_p11 }
  0x27   : > { %p983_p7 = pnand %p982_p5, %p976_p12 }
  0x29   : > { %986 = shalt.err (!%p983_p7)
}
  0x2a   : > { %s1056_s29 = smov 256   ;;  %s1057_s30 = smov 16  }
  0x2b   : > { %907 = dma.hbm_to_vmem [thread:$0]  (!%p1151_p13), %s1147_s4, 4096, %s1155_s6, %s1157_s8, %s1056_s29, %s1056_s29, %s1057_s30  }
  0x2c   : > { %p805_p9 = scmp.ge.s32.totalorder %s1053_s15, 1  ;;  %p156_p1 = scmp.lt.s32.totalorder %s1053_s15, 3 }
  0x2e   : > { %p157_p3 = pnand %p805_p9, %p156_p1 }
  0x2f   : > { %s1188_s5 = sand.u32 (!%p157_p3), 1, %s1045_s13  }
  0x30   : > { %160 = sbr.rel (%p157_p3) target bundleno = 853 (0x355), region = 32  ;;  %s806_s9 = sshll.u32 (!%p157_p3), %s1188_s5, 8 }
  0x31   : > { %s163_s10 = scalar_lea.sflag (!%p157_p3), [#allocation3], %s1188_s5  ;;  %s1194_s11 = scalar_lea.vmem (!%p157_p3), [#allocation2], %s806_s9 }
  0x37   : > { %1032 = dma.done.wait (%p1127_p6), %s163_s10, 4096  }
  0x38   : > { %1034 = vsyncadd (%p1127_p6), %s163_s10, 4294963200  ;;  %v1201_v0 = vld [vmem:[%s1194_s11] sm:$0xff]  ;;  %v1204_v1 = vld [vmem:[%s1194_s11 + $0x8] sm:$0xff]  ;;  %v1058_v38 = vmov 0.0|0.0   ;;  %vm1059_vm0 = vmmov 0   ;;  %vm328_vm1 = vcmask 130112  }
  0x39   : > { %v1207_v2 = vld [vmem:[%s1194_s11 + $0x20] sm:$0xff]  ;;  %v221_v3 = vadd.f32 %v1204_v1, %v1201_v0  ;;  %v1212_v4 = vld [vmem:[%s1194_s11 + $0x28] sm:$0xff]  ;;  %v1215_v5 = vld [vmem:[%s1194_s11 + $0x10] sm:$0xff]  ;;  %876 = vmatprep.subr.bf16.mxu0 %v1058_v38  ;;  %vm335_vm2 = vcmask 195712   ;;  %vm342_vm3 = vcmask 261312   ;;  %vm349_vm4 = vcmask 326912  }
  0x3a   : > { %v1218_v6 = vld [vmem:[%s1194_s11 + $0x18] sm:$0xff]  ;;  %v227_v7 = vadd.f32 %v1212_v4, %v1207_v2  ;;  %v1223_v8 = vld [vmem:[%s1194_s11 + $0x30] sm:$0xff]  ;;  %v1233_v12 = vld [vmem:[%s1194_s11 + $0x40] sm:$0xff]  ;;  %vm356_vm5 = vcmask 392512   ;;  %vm363_vm6 = vcmask 458112   ;;  %vm370_vm7 = vcmask 523712  }
  0x3b   : > { %v1226_v9 = vld [vmem:[%s1194_s11 + $0x38] sm:$0xff]  ;;  %222 = vadd.xlane.f32.xlu0 %v221_v3  ;;  %v224_v10 = vadd.f32 %v1218_v6, %v1215_v5  ;;  %v1236_v13 = vld [vmem:[%s1194_s11 + $0x48] sm:$0xff]  ;;  %v1239_v14 = vld [vmem:[%s1194_s11 + $0x50] sm:$0xff]  ;;  %vm377_vm8 = vcmask 589312   ;;  %vm384_vm9 = vcmask 654912   ;;  %vm391_vm10 = vcmask 720512  }
  0x3c   : > { %228 = vadd.xlane.f32.xlu1 %v227_v7  ;;  %v230_v11 = vadd.f32 %v1226_v9, %v1223_v8  ;;  %v1242_v15 = vld [vmem:[%s1194_s11 + $0x58] sm:$0xff]  ;;  %v233_v16 = vadd.f32 %v1236_v13, %v1233_v12  ;;  %v1249_v18 = vld [vmem:[%s1194_s11 + $0x60] sm:$0xff]  ;;  %v1252_v19 = vld [vmem:[%s1194_s11 + $0x68] sm:$0xff]  ;;  %vm398_vm11 = vcmask 786112   ;;  %vm405_vm12 = vcmask 851712   ;;  %s1423_s6 = scalar_lea.vmem [#allocation5], %s806_s9 }
  0x3d   : > { %v236_v17 = vadd.f32 %v1242_v15, %v1239_v14  ;;  %v1255_v20 = vld [vmem:[%s1194_s11 + $0x70] sm:$0xff]  ;;  %v1258_v21 = vld [vmem:[%s1194_s11 + $0x78] sm:$0xff]  ;;  %v239_v22 = vadd.f32 %v1252_v19, %v1249_v18  ;;  %v1265_v24 = vld [vmem:[%s1194_s11 + $0x80] sm:$0xff]  ;;  %vm412_vm13 = vcmask 917312   ;;  %vm419_vm14 = vcmask 982912   ;;  %s816_s9 = sshll.u32 %s1105_s16, 12 }
  0x3e   : > { %v242_v23 = vadd.f32 %v1258_v21, %v1255_v20  ;;  %v1268_v25 = vld [vmem:[%s1194_s11 + $0x88] sm:$0xff]  ;;  %v1271_v26 = vld [vmem:[%s1194_s11 + $0x90] sm:$0xff]  ;;  %v1274_v27 = vld [vmem:[%s1194_s11 + $0x98] sm:$0xff]  ;;  %vm426_vm15 = vcmask 1048512   ;;  %s726_s7 = sshll.u32 %s1423_s6, 4  ;;  %s1486_s19 = scalar_lea.hbm %s1539_s3, %s816_s9  ;;  %s1488_s7 = int_to_ptr.vmem [resolvable:$true] %s726_s7 }
  0x3f   : > { %225 = vadd.xlane.f32.xlu0 %v224_v10  ;;  %v245_v28 = vadd.f32 %v1268_v25, %v1265_v24  ;;  %v248_v29 = vadd.f32 %v1274_v27, %v1271_v26  ;;  %v1281_v30 = vld [vmem:[%s1194_s11 + $0xa0] sm:$0xff]  ;;  %v1284_v31 = vld [vmem:[%s1194_s11 + $0xa8] sm:$0xff]  ;;  %v1287_v32 = vld [vmem:[%s1194_s11 + $0xb0] sm:$0xff]  ;;  %s713_s16 = scalar_lea.sflag [#allocation4], %s1188_s5  ;;  %s987_s20 = scalar_lea.vmem %s1488_s7, 4096 }
  0x40   : > { %231 = vadd.xlane.f32.xlu1 %v230_v11  ;;  %v1290_v33 = vld [vmem:[%s1194_s11 + $0xb8] sm:$0xff]  ;;  %v285_v34 = vld [vmem:[%s1537_s1] sm:$0xff]  ;;  %v286_v35 = vld [vmem:[%s1537_s1 + $0x8] sm:$0xff]  ;;  %v251_v37 = vadd.f32 %v1284_v31, %v1281_v30  ;;  %p988_p6 = scmp.ne.s32.totalorder %s1488_s7, %s987_s20  ;;  %p1546_p11 = scmp.ne.s32.totalorder %s1543_s24, 0 }
  0x41   : > { %v877_v36 = vpack.c.bf16 %v286_v35, %v285_v34  ;;  %v254_v39 = vadd.f32 %v1290_v33, %v1287_v32  ;;  %v1303_v40 = vld [vmem:[%s1194_s11 + $0xc0] sm:$0xff]  ;;  %v1306_v41 = vld [vmem:[%s1194_s11 + $0xc8] sm:$0xff]  ;;  %v1309_v42 = vld [vmem:[%s1194_s11 + $0xd0] sm:$0xff]  ;;  %v317_v34 = vlaneseq  ;;  %s1061_s22 = smov [#allocation5]  }
  0x42   : > { %v1312_v43 = vld [vmem:[%s1194_s11 + $0xd8] sm:$0xff]  ;;  %v287_v44 = vld [vmem:[%s1537_s1 + $0x10] sm:$0xff]  ;;  %v257_v47 = vadd.f32 %v1306_v41, %v1303_v40  ;;  %v1325_v49 = vld [vmem:[%s1194_s11 + $0xe0] sm:$0xff]  ;;  %p989_p12 = pnand %p988_p6, %p1546_p11  ;;  %s991_s26 = sshll.u32 %s1061_s22, 4  ;;  %s992_s26 = int_to_ptr.vmem [resolvable:$false] %s991_s26 }
  0x43   : > { %234 = vadd.xlane.f32.xlu0 %v233_v16  ;;  %878 = vmatpush3.bf16.msra.mxu0 %v877_v36  ;;  %v288_v45 = vld [vmem:[%s1537_s1 + $0x18] sm:$0xff]  ;;  %v260_v48 = vadd.f32 %v1312_v43, %v1309_v42  ;;  %v1328_v50 = vld [vmem:[%s1194_s11 + $0xe8] sm:$0xff]  ;;  %v1331_v51 = vld [vmem:[%s1194_s11 + $0xf0] sm:$0xff]  ;;  %v1376_v35 = vand.u32 127, %v317_v34  ;;  %v1378_v36 = vshrl.u32 %v317_v34, 7  ;;  %s993_s27 = scalar_lea.vmem %s992_s26, 8192  ;;  %p994_p8 = scmp.lt.s32.totalorder %s1488_s7, %s992_s26 }
  0x44   : > { %237 = vadd.xlane.f32.xlu1 %v236_v17  ;;  %879 = vmatprep.subr.bf16.mxu0 %v1058_v38  ;;  %v880_v46 = vpack.c.bf16 %v288_v45, %v287_v44  ;;  %v1334_v52 = vld [vmem:[%s1194_s11 + $0xf8] sm:$0xff]  ;;  %v289_v53 = vld [vmem:[%s1537_s1 + $0x20] sm:$0xff]  ;;  %v290_v54 = vld [vmem:[%s1537_s1 + $0x28] sm:$0xff]  ;;  %v263_v56 = vadd.f32 %v1328_v50, %v1325_v49  ;;  %p990_p13 = pneg %p989_p12  ;;  %p995_p10 = scmp.lt.s32.totalorder %s993_s27, %s987_s20 }
  0x45   : > { %v883_v55 = vpack.c.bf16 %v290_v54, %v289_v53  ;;  %v266_v57 = vadd.f32 %v1334_v52, %v1331_v51  ;;  %v291_v58 = vld [vmem:[%s1537_s1 + $0x30] sm:$0xff]  ;;  %v292_v59 = vld [vmem:[%s1537_s1 + $0x38] sm:$0xff]  ;;  %v293_v61 = vld [vmem:[%s1537_s1 + $0x40] sm:$0xff]  ;;  %v337_v44 = vadd.s32 4294967272, %v1376_v35  ;;  %v344_v53 = vadd.s32 4294967264, %v1376_v35 }
  0x46   : > { %v886_v60 = vpack.c.bf16 %v292_v59, %v291_v58  ;;  %v294_v62 = vld [vmem:[%s1537_s1 + $0x48] sm:$0xff]  ;;  %v295_v3 = vld [vmem:[%s1537_s1 + $0x50] sm:$0xff]  ;;  %v296_v7 = vld [vmem:[%s1537_s1 + $0x58] sm:$0xff]  ;;  %v351_v58 = vadd.s32 4294967256, %v1376_v35  ;;  %p996_p0 = por %p995_p10, %p994_p8 }
  0x47   : > { %240 = vadd.xlane.f32.xlu0 %v239_v22  ;;  %881 = vmatpush3.bf16.msra.mxu0 %v880_v46  ;;  %v889_v63 = vpack.c.bf16 %v294_v62, %v293_v61  ;;  %v892_v10 = vpack.c.bf16 %v296_v7, %v295_v3  ;;  %v297_v11 = vld [vmem:[%s1537_s1 + $0x60] sm:$0xff]  ;;  %v298_v16 = vld [vmem:[%s1537_s1 + $0x68] sm:$0xff]  ;;  %v299_v22 = vld [vmem:[%s1537_s1 + $0x70] sm:$0xff]  ;;  %v321_v46 = vsub.s32 %v1376_v35, %v1378_v36  ;;  %v358_v7 = vadd.s32 4294967248, %v1376_v35 }
  0x48   : > { %243 = vadd.xlane.f32.xlu1 %v242_v23  ;;  %882 = vmatprep.subr.bf16.mxu0 %v1058_v38  ;;  %v895_v17 = vpack.c.bf16 %v298_v16, %v297_v11  ;;  %v300_v23 = vld [vmem:[%s1537_s1 + $0x78] sm:$0xff]  ;;  %v347_v3 = vsub.s32 %v344_v53, %v1378_v36  ;;  %v379_v53 = vadd.s32 4294967224, %v1376_v35  ;;  %p997_p2 = pnand %p996_p0, %p990_p13 }
  0x4b   : > { %246 = vadd.xlane.f32.xlu0 %v245_v28  ;;  %884 = vmatpush3.bf16.msra.mxu0 %v883_v55  ;;  %v898_v28 = vpack.c.bf16 %v300_v23, %v299_v22  ;;  %v365_v22 = vadd.s32 4294967240, %v1376_v35 }
  0x4c   : > { %249 = vadd.xlane.f32.xlu1 %v248_v29  ;;  %885 = vmatprep.subr.bf16.mxu0 %v1058_v38  ;;  %v1060_v29 = vmov 0.0  }
  0x4d   : > { %868 = vmatprep.mubr.msk.f32.mxu0 %vm1059_vm0, %v1060_v29  ;;  %871 = vmatprep.subr.mxu1 %v1060_v29 }
  0x4e   : > { %873 = vmatprep.mubr.msk.f32.mxu1 %vm1059_vm0, %v1060_v29  ;;  %vm501_vm0 = vcmask 64512  }
  0x4f   : > { %252 = vadd.xlane.f32.xlu0 %v251_v37  ;;  %887 = vmatpush3.bf16.msra.mxu0 %v886_v60  ;;  %v323_v37 = vadd.s32 4294967288, %v1376_v35 }
  0x50   : > { %255 = vadd.xlane.f32.xlu1 %v254_v39  ;;  %888 = vmatprep.subr.bf16.mxu0 %v1058_v38  ;;  %v330_v39 = vadd.s32 4294967280, %v1376_v35 }
  0x52   : > { %v333_v54 = vsub.s32 %v330_v39, %v1378_v36 }
  0x53   : > { %258 = vadd.xlane.f32.xlu0 %v257_v47  ;;  %890 = vmatpush3.bf16.msra.mxu0 %v889_v63 }
  0x54   : > { %261 = vadd.xlane.f32.xlu1 %v260_v48  ;;  %891 = vmatprep.subr.bf16.mxu0 %v1058_v38  ;;  %v326_v48 = vsub.s32 %v323_v37, %v1378_v36 }
  0x57   : > { %264 = vadd.xlane.f32.xlu0 %v263_v56  ;;  %893 = vmatpush3.bf16.msra.mxu0 %v892_v10 }
  0x58   : > { %267 = vadd.xlane.f32.xlu1 %v266_v57  ;;  %894 = vmatprep.subr.bf16.mxu0 %v1058_v38  ;;  %v340_v57 = vsub.s32 %v337_v44, %v1378_v36  ;;  %v361_v44 = vsub.s32 %v358_v7, %v1378_v36  ;;  %v393_v7 = vadd.s32 4294967208, %v1376_v35 }
  0x5b   : > { %896 = vmatpush3.bf16.msra.mxu0 %v895_v17  ;;  %v354_v17 = vsub.s32 %v351_v58, %v1378_v36 }
  0x5c   : > { %897 = vmatprep.subr.bf16.mxu0 %v1058_v38 }
  0x5f   : > { %899 = vmatpush3.bf16.msra.mxu0 %v898_v28 }
  0xc8   : > { %v223_v38 = vpop.xlane.xlu0 %222 }
  0xc9   : > { %v229_v45 = vpop.xlane.xlu1 %228  ;;  %v269_v47 = vmul.f32 0.00390625, %v223_v38 }
  0xca   : > { %v271_v55 = vmul.f32 0.00390625, %v229_v45  ;;  %v372_v45 = vadd.s32 4294967232, %v1376_v35 }
  0xcb   : > { %v322_v62 = vrot.slane %v269_v47, %v321_v46 }
  0xcc   : > { %v226_v56 = vpop.xlane.xlu0 %225  ;;  %v334_v10 = vrot.slane %v271_v55, %v333_v54 }
  0xcd   : > { %v270_v59 = vmul.f32 0.00390625, %v226_v56  ;;  %v232_v60 = vpop.xlane.xlu1 %231 }
  0xce   : > { %v272_v61 = vmul.f32 0.00390625, %v232_v60  ;;  %v386_v60 = vadd.s32 4294967216, %v1376_v35 }
  0xcf   : > { %v327_v63 = vrot.slane %v270_v59, %v326_v48  ;;  %v368_v48 = vsub.s32 %v365_v22, %v1378_v36  ;;  %v375_v59 = vsub.s32 %v372_v45, %v1378_v36 }
  0xd0   : > { %v341_v11 = vrot.slane %v272_v61, %v340_v57  ;;  %v235_v16 = vpop.xlane.xlu0 %234 }
  0xd1   : > { %v329_v23 = vsel %vm328_vm1, %v327_v63, %v322_v62  ;;  %v273_v28 = vmul.f32 0.00390625, %v235_v16  ;;  %v238_v29 = vpop.xlane.xlu1 %237 }
  0xd2   : > { %v336_v34 = vsel %vm335_vm2, %v334_v10, %v329_v23  ;;  %v274_v37 = vmul.f32 0.00390625, %v238_v29  ;;  %v389_v23 = vsub.s32 %v386_v60, %v1378_v36 }
  0xd3   : > { %v343_v38 = vsel %vm342_vm3, %v341_v11, %v336_v34  ;;  %v348_v39 = vrot.slane %v273_v28, %v347_v3  ;;  %v382_v3 = vsub.s32 %v379_v53, %v1378_v36  ;;  %v400_v28 = vadd.s32 4294967200, %v1376_v35 }
  0xd4   : > { %v355_v46 = vrot.slane %v274_v37, %v354_v17  ;;  %v241_v47 = vpop.xlane.xlu0 %240 }
  0xd5   : > { %v350_v54 = vsel %vm349_vm4, %v348_v39, %v343_v38  ;;  %v275_v55 = vmul.f32 0.00390625, %v241_v47  ;;  %v244_v56 = vpop.xlane.xlu1 %243  ;;  %v396_v38 = vsub.s32 %v393_v7, %v1378_v36  ;;  %v407_v39 = vadd.s32 4294967192, %v1376_v35 }
  0xd6   : > { %v276_v57 = vmul.f32 0.00390625, %v244_v56  ;;  %v357_v61 = vsel %vm356_vm5, %v355_v46, %v350_v54  ;;  %v403_v53 = vsub.s32 %v400_v28, %v1378_v36  ;;  %v414_v54 = vadd.s32 4294967184, %v1376_v35 }
  0xd7   : > { %v362_v58 = vrot.slane %v275_v55, %v361_v44 }
  0xd8   : > { %v369_v62 = vrot.slane %v276_v57, %v368_v48  ;;  %v247_v63 = vpop.xlane.xlu0 %246  ;;  %v417_v7 = vsub.s32 %v414_v54, %v1378_v36 }
  0xd9   : > { %v364_v10 = vsel %vm363_vm6, %v362_v58, %v357_v61  ;;  %v277_v11 = vmul.f32 0.00390625, %v247_v63  ;;  %v250_v16 = vpop.xlane.xlu1 %249  ;;  %v410_v58 = vsub.s32 %v407_v39, %v1378_v36 }
  0xda   : > { %v278_v17 = vmul.f32 0.00390625, %v250_v16  ;;  %v371_v29 = vsel %vm370_vm7, %v369_v62, %v364_v10 }
  0xdb   : > { %v376_v22 = vrot.slane %v277_v11, %v375_v59  ;;  %v421_v59 = vadd.s32 4294967176, %v1376_v35 }
  0xdc   : > { %v383_v34 = vrot.slane %v278_v17, %v382_v3  ;;  %v253_v37 = vpop.xlane.xlu0 %252 }
  0xdd   : > { %v378_v44 = vsel %vm377_vm8, %v376_v22, %v371_v29  ;;  %v279_v45 = vmul.f32 0.00390625, %v253_v37  ;;  %v256_v46 = vpop.xlane.xlu1 %255  ;;  %v424_v17 = vsub.s32 %v421_v59, %v1378_v36 }
  0xde   : > { %v280_v47 = vmul.f32 0.00390625, %v256_v46  ;;  %v385_v55 = vsel %vm384_vm9, %v383_v34, %v378_v44  ;;  %v500_v44 = vld [vmem:[%s1538_s2] sm:$0xff] }
  0xdf   : > { %v390_v48 = vrot.slane %v279_v45, %v389_v23  ;;  %872 = vmatpush3.msra.mxu1 %v500_v44 }
  0xe0   : > { %v397_v56 = vrot.slane %v280_v47, %v396_v38  ;;  %v259_v57 = vpop.xlane.xlu0 %258 }
  0xe1   : > { %v392_v60 = vsel %vm391_vm10, %v390_v48, %v385_v55  ;;  %v281_v61 = vmul.f32 0.00390625, %v259_v57  ;;  %v262_v62 = vpop.xlane.xlu1 %261  ;;  %v583_v57 = vsub.s32 0, %v1378_v36 }
  0xe2   : > { %v282_v63 = vmul.f32 0.00390625, %v262_v62  ;;  %v399_v10 = vsel %vm398_vm11, %v397_v56, %v392_v60 }
  0xe3   : > { %v404_v3 = vrot.slane %v281_v61, %v403_v53 }
  0xe4   : > { %v411_v11 = vrot.slane %v282_v63, %v410_v58  ;;  %v265_v16 = vpop.xlane.xlu0 %264 }
  0xe5   : > { %v406_v22 = vsel %vm405_vm12, %v404_v3, %v399_v10  ;;  %v283_v23 = vmul.f32 0.00390625, %v265_v16  ;;  %v268_v28 = vpop.xlane.xlu1 %267 }
  0xe6   : > { %v284_v29 = vmul.f32 0.00390625, %v268_v28  ;;  %v413_v37 = vsel %vm412_vm13, %v411_v11, %v406_v22 }
  0xe7   : > { %v418_v35 = vrot.slane %v283_v23, %v417_v7 }
  0xe8   : > { %v425_v34 = vrot.slane %v284_v29, %v424_v17 }
  0xe9   : > { %v420_v38 = vsel %vm419_vm14, %v418_v35, %v413_v37 }
  0xea   : > { %v427_v39 = vsel %vm426_vm15, %v425_v34, %v420_v38 }
  0xeb   : > { %869 = vmatmul.mubr.f32.vlgmr.msra.gmra.mrb[0].mxu0 %v427_v39 }
 0x1be   : > { %v495_v45 = vpop.f32.mrb[0].mxu0 }
 0x1bf   : > { %v499_v46 = vmax.f32 %v495_v45, 0.0  ;;  %v870_v47 = vpop.f32.mrb[1].mxu0 }
 0x1c1   : > { %874 = vmatmul.mubr.msk.f32.vlgmr.msra.gmra.mrb[0].mxu1 %vm501_vm0, %v499_v46 }
 0x294   : > { %v571_v48 = vpop.f32.mrb[0].mxu1 }
 0x295   : > { %v809_v53 = vmul.f32 -1.442695, %v571_v48  ;;  %v875_v54 = vpop.f32.mrb[1].mxu1 }
 0x297   : > { %953 = vpow2.f32 %v809_v53 }
 0x2a1   : > { %v954_v55 = vpop.eup %953 }
 0x2a2   : > { %v578_v56 = vadd.f32 1.0, %v954_v55 }
 0x2a4   : > { %955 = vrcp.f32 %v578_v56 }
 0x2ae   : > { %v956_v58 = vpop.eup %955 }
 0x2af   : > { %v584_v59 = vrot.slane %v956_v58, %v583_v57 }
 0x2b1   : > { %590 = vbcast.lane.b32.xlu1 %v584_v59, 264  ;;  %586 = vbcast.lane.b32.xlu0 %v584_v59, 256 }
 0x2b5   : > { %594 = vbcast.lane.b32.xlu1 %v584_v59, 272  ;;  %602 = vbcast.lane.b32.xlu0 %v584_v59, 288 }
 0x2b9   : > { %598 = vbcast.lane.b32.xlu1 %v584_v59, 280  ;;  %610 = vbcast.lane.b32.xlu0 %v584_v59, 304 }
 0x2bd   : > { %606 = vbcast.lane.b32.xlu1 %v584_v59, 296  ;;  %618 = vbcast.lane.b32.xlu0 %v584_v59, 320 }
 0x2c1   : > { %614 = vbcast.lane.b32.xlu1 %v584_v59, 312  ;;  %626 = vbcast.lane.b32.xlu0 %v584_v59, 336 }
 0x2c5   : > { %622 = vbcast.lane.b32.xlu1 %v584_v59, 328  ;;  %634 = vbcast.lane.b32.xlu0 %v584_v59, 352 }
 0x2c9   : > { %630 = vbcast.lane.b32.xlu1 %v584_v59, 344  ;;  %642 = vbcast.lane.b32.xlu0 %v584_v59, 368 }
 0x2cd   : > { %638 = vbcast.lane.b32.xlu1 %v584_v59, 360 }
 0x2d1   : > { %646 = vbcast.lane.b32.xlu1 %v584_v59, 376 }
 0x323   : > { %v591_v36 = vpop.permute.xlu1 %590  ;;  %v587_v60 = vpop.permute.xlu0 %586 }
 0x324   : > { %v650_v61 = vmul.f32 %v591_v36, %v1215_v5  ;;  %v651_v62 = vmul.f32 %v591_v36, %v1218_v6  ;;  %v648_v63 = vmul.f32 %v587_v60, %v1201_v0  ;;  %v649_v3 = vmul.f32 %v587_v60, %v1204_v1 }
 0x326   : > { %682 = vst [vmem:[%s1423_s6 + $0x10] sm:$0xff] %v650_v61  ;;  %683 = vst [vmem:[%s1423_s6 + $0x18] sm:$0xff] %v651_v62 }
 0x327   : > { %680 = vst [vmem:[%s1423_s6] sm:$0xff] %v648_v63  ;;  %681 = vst [vmem:[%s1423_s6 + $0x8] sm:$0xff] %v649_v3  ;;  %v595_v5 = vpop.permute.xlu1 %594  ;;  %v603_v0 = vpop.permute.xlu0 %602 }
 0x328   : > { %v652_v1 = vmul.f32 %v595_v5, %v1207_v2  ;;  %v653_v6 = vmul.f32 %v595_v5, %v1212_v4  ;;  %v656_v7 = vmul.f32 %v603_v0, %v1233_v12  ;;  %v657_v10 = vmul.f32 %v603_v0, %v1236_v13 }
 0x32a   : > { %684 = vst [vmem:[%s1423_s6 + $0x20] sm:$0xff] %v652_v1  ;;  %685 = vst [vmem:[%s1423_s6 + $0x28] sm:$0xff] %v653_v6 }
 0x32b   : > { %688 = vst [vmem:[%s1423_s6 + $0x40] sm:$0xff] %v656_v7  ;;  %689 = vst [vmem:[%s1423_s6 + $0x48] sm:$0xff] %v657_v10  ;;  %v599_v11 = vpop.permute.xlu1 %598  ;;  %v611_v16 = vpop.permute.xlu0 %610 }
 0x32c   : > { %v654_v17 = vmul.f32 %v599_v11, %v1223_v8  ;;  %v655_v2 = vmul.f32 %v599_v11, %v1226_v9  ;;  %v660_v4 = vmul.f32 %v611_v16, %v1249_v18  ;;  %v661_v12 = vmul.f32 %v611_v16, %v1252_v19 }
 0x32e   : > { %686 = vst [vmem:[%s1423_s6 + $0x30] sm:$0xff] %v654_v17  ;;  %687 = vst [vmem:[%s1423_s6 + $0x38] sm:$0xff] %v655_v2 }
 0x32f   : > { %692 = vst [vmem:[%s1423_s6 + $0x60] sm:$0xff] %v660_v4  ;;  %693 = vst [vmem:[%s1423_s6 + $0x68] sm:$0xff] %v661_v12  ;;  %v607_v13 = vpop.permute.xlu1 %606  ;;  %v619_v22 = vpop.permute.xlu0 %618 }
 0x330   : > { %v658_v23 = vmul.f32 %v607_v13, %v1239_v14  ;;  %v659_v8 = vmul.f32 %v607_v13, %v1242_v15  ;;  %v664_v9 = vmul.f32 %v619_v22, %v1265_v24  ;;  %v665_v18 = vmul.f32 %v619_v22, %v1268_v25 }
 0x332   : > { %690 = vst [vmem:[%s1423_s6 + $0x50] sm:$0xff] %v658_v23  ;;  %691 = vst [vmem:[%s1423_s6 + $0x58] sm:$0xff] %v659_v8 }
 0x333   : > { %696 = vst [vmem:[%s1423_s6 + $0x80] sm:$0xff] %v664_v9  ;;  %697 = vst [vmem:[%s1423_s6 + $0x88] sm:$0xff] %v665_v18  ;;  %v615_v19 = vpop.permute.xlu1 %614  ;;  %v627_v28 = vpop.permute.xlu0 %626 }
 0x334   : > { %v662_v29 = vmul.f32 %v615_v19, %v1255_v20  ;;  %v663_v14 = vmul.f32 %v615_v19, %v1258_v21  ;;  %v668_v15 = vmul.f32 %v627_v28, %v1281_v30  ;;  %v669_v24 = vmul.f32 %v627_v28, %v1284_v31 }
 0x336   : > { %694 = vst [vmem:[%s1423_s6 + $0x70] sm:$0xff] %v662_v29  ;;  %695 = vst [vmem:[%s1423_s6 + $0x78] sm:$0xff] %v663_v14 }
 0x337   : > { %700 = vst [vmem:[%s1423_s6 + $0xa0] sm:$0xff] %v668_v15  ;;  %701 = vst [vmem:[%s1423_s6 + $0xa8] sm:$0xff] %v669_v24  ;;  %v623_v25 = vpop.permute.xlu1 %622  ;;  %v635_v35 = vpop.permute.xlu0 %634 }
 0x338   : > { %v666_v34 = vmul.f32 %v623_v25, %v1271_v26  ;;  %v667_v20 = vmul.f32 %v623_v25, %v1274_v27  ;;  %v672_v21 = vmul.f32 %v635_v35, %v1303_v40  ;;  %v673_v30 = vmul.f32 %v635_v35, %v1306_v41 }
 0x33a   : > { %698 = vst [vmem:[%s1423_s6 + $0x90] sm:$0xff] %v666_v34  ;;  %699 = vst [vmem:[%s1423_s6 + $0x98] sm:$0xff] %v667_v20 }
 0x33b   : > { %704 = vst [vmem:[%s1423_s6 + $0xc0] sm:$0xff] %v672_v21  ;;  %705 = vst [vmem:[%s1423_s6 + $0xc8] sm:$0xff] %v673_v30  ;;  %v631_v31 = vpop.permute.xlu1 %630  ;;  %v643_v37 = vpop.permute.xlu0 %642 }
 0x33c   : > { %v670_v26 = vmul.f32 %v631_v31, %v1287_v32  ;;  %v671_v38 = vmul.f32 %v631_v31, %v1290_v33  ;;  %v676_v27 = vmul.f32 %v643_v37, %v1325_v49  ;;  %v677_v40 = vmul.f32 %v643_v37, %v1328_v50 }
 0x33e   : > { %702 = vst [vmem:[%s1423_s6 + $0xb0] sm:$0xff] %v670_v26  ;;  %703 = vst [vmem:[%s1423_s6 + $0xb8] sm:$0xff] %v671_v38 }
 0x33f   : > { %708 = vst [vmem:[%s1423_s6 + $0xe0] sm:$0xff] %v676_v27  ;;  %709 = vst [vmem:[%s1423_s6 + $0xe8] sm:$0xff] %v677_v40  ;;  %v639_v41 = vpop.permute.xlu1 %638 }
 0x340   : > { %v674_v39 = vmul.f32 %v639_v41, %v1309_v42  ;;  %v675_v44 = vmul.f32 %v639_v41, %v1312_v43 }
 0x342   : > { %706 = vst [vmem:[%s1423_s6 + $0xd0] sm:$0xff] %v674_v39  ;;  %707 = vst [vmem:[%s1423_s6 + $0xd8] sm:$0xff] %v675_v44 }
 0x343   : > { %v647_v32 = vpop.permute.xlu1 %646 }
 0x344   : > { %v678_v33 = vmul.f32 %v647_v32, %v1331_v51  ;;  %v679_v42 = vmul.f32 %v647_v32, %v1334_v52 }
 0x346   : > { %710 = vst [vmem:[%s1423_s6 + $0xf0] sm:$0xff] %v678_v33  ;;  %711 = vst [vmem:[%s1423_s6 + $0xf8] sm:$0xff] %v679_v42 }
 0x347   : > { %1000 = shalt.err (!%p997_p2)
}
 0x348   : > { %s1001_s28 = scalar_lea.hbm %s1486_s19, 4096  ;;  %s1005_s10 = scalar_lea.hbm %s1539_s3, 8192 }
 0x349   : > { %p1002_p4 = scmp.ne.s32.totalorder %s1486_s19, %s1001_s28  ;;  %p1006_p9 = scmp.lt.u32.totalorder %s1486_s19, %s1539_s3 }
 0x34a   : > { %p1007_p1 = scmp.lt.u32.totalorder %s1005_s10, %s1001_s28  ;;  %p1009_p6 = scmp.lt.u32.totalorder %s1001_s28, %s1486_s19 }
 0x34b   : > { %p1003_p5 = pnand %p1002_p4, %p1546_p11 }
 0x34c   : > { %p1008_p3 = por %p1007_p1, %p1006_p9 }
 0x34d   : > { %p1004_p7 = pneg %p1003_p5 }
 0x34e   : > { %p1010_p12 = por %p1009_p6, %p1008_p3 }
 0x350   : > { %p1011_p13 = pnand %p1010_p12, %p1004_p7 }
 0x352   : > { %1014 = shalt.err (!%p1011_p13)
}
 0x353   : > { %s1062_s4 = smov 256   ;;  %s1063_s6 = smov 16  }
 0x354   : > { %902 = dma.vmem_to_hbm [thread:$0]  (%p1546_p11), %s1488_s7, 4096, %s1486_s19, %s713_s16, %s1062_s4, %s1062_s4, %s1063_s6  }
 0x355 PF: > { %s741_s9 = sand.u32 1, %s1041_s12   ;;  %p1547_p8 = scmp.ne.s32.totalorder %s1544_s25, 0 }
 0x356   : > { %p1548_p10 = scmp.ge.s32.totalorder %s1053_s15, 2  ;;  %s742_s8 = scalar_lea.sflag [#allocation4], %s741_s9 }
 0x358   : > { %p909_p0 = pnand %p1548_p10, %p1547_p8 }
 0x35a   : > { %1036 = dma.done.wait (!%p909_p0), %s742_s8, 4096  }
 0x35b   : > { %1038 = vsyncadd (!%p909_p0), %s742_s8, 4294963200  ;;  %p16_p2 = scmp.ge.s32.totalorder %s1109_s18, 4   ;;  %s1549_s12 = smov %s1045_s13 }
 0x35c   : > { %s1550_s13 = smov %s1049_s14  ;;  %s1551_s14 = smov %s1121_s21 }
 0x35d   : > { %s1552_s15 = smov %s1109_s18  ;;  %18 = sbr.rel (!%p16_p2) target bundleno = 5 (0x5), region = 77 }
 0x364   :  { %747 = vsyncpa [#allocation3], 1 }
 0x365   :  { %749 = vsyncpa [#allocation3 + $0x1], 1 }
 0x366   :  { %750 = vsyncpa [#allocation4], 1 }
 0x367   :  { %752 = vsyncpa [#allocation4 + $0x1], 1 }

</bundles_post_ra>
